<compile_context>
chip_gen: v6e
topology: v6e:2x2x1
jax: 0.10.0
libtpu: 0.0.40
codegen_flags: <defaults>
</compile_context>

<pallas_src>
import jax
import jax.numpy as jnp
from jax import lax
from jax.experimental import pallas as pl
from jax.experimental.pallas import tpu as pltpu


def _projector_kernel(x_ref, w_ref, b_ref, o_ref):
    # x_ref: (B, C_in, TS) in x.dtype, w_ref: (C_out, C_in) in x.dtype,
    # b_ref: (C_out, 1) f32, o_ref: (B, C_out, TS) in x.dtype.
    w = w_ref[...]
    c_out, ts = o_ref.shape[1], o_ref.shape[2]
    # Hoist the bias broadcast out of the batch loop (JAX does not CSE it).
    bias = jnp.broadcast_to(b_ref[...], (c_out, ts))          # (C_out, TS) f32
    nb = x_ref.shape[0]                                       # static

    def body(i, carry):
        x = x_ref[i]                                          # (C_in, TS), native dtype
        # Native-dtype MXU matmul with f32 accumulation.
        y = jnp.dot(w, x, preferred_element_type=jnp.float32)  # (C_out, TS) f32
        o_ref[i] = jnp.maximum(y + bias, 0.0).astype(o_ref.dtype)
        return carry

    lax.fori_loop(0, nb, body, 0, unroll=True)


def _vmem_capacity_bytes():
    try:
        info = pltpu.get_tpu_info()
        cap = getattr(info, "vmem_capacity_bytes", None)
        if cap:
            return int(cap)
    except Exception:
        pass
    return 64 * 1024 * 1024  # conservative: v7x per-core VMEM


def projector_block(x, params, *, eps=1e-5):
    """Inference-mode ProjectorBlock: relu(bn(conv1x1(x))).

    x: (N, C_in, H, W) float32 or bfloat16. Returns (N, C_out, H, W) in x.dtype.
    """
    N, C_in, H, W = x.shape
    S = H * W
    conv_w = params["conv_w"].reshape(params["conv_w"].shape[0], C_in)
    C_out = conv_w.shape[0]

    # Fold inference-mode BatchNorm into the 1x1 conv (fold in f32, then cast
    # the weight to the activation dtype so the MXU runs its native path).
    scale = params["bn_gamma"].astype(jnp.float32) / jnp.sqrt(
        params["bn_var"].astype(jnp.float32) + eps)                       # (C_out,)
    w_eff = (conv_w.astype(jnp.float32) * scale[:, None]).astype(x.dtype)  # (C_out, C_in)
    b_eff = (params["bn_beta"].astype(jnp.float32)
             - params["bn_mean"].astype(jnp.float32) * scale
             ).reshape(C_out, 1).astype(jnp.float32)                       # (C_out, 1)

    itemsize = jnp.dtype(x.dtype).itemsize

    # ---- layout: lane-dense spatial axis, padded to a multiple of 128 so all
    #      output stores are unmasked.
    S_pad = ((S + 127) // 128) * 128
    x3 = x.reshape(N, C_in, S)
    if S_pad != S:
        x3 = jnp.pad(x3, ((0, 0), (0, 0), (0, S_pad - S)))

    # ---- per-generation VMEM limit & per-step working-set target.
    vmem_cap = _vmem_capacity_bytes()
    if vmem_cap >= 100 * (1 << 20):      # v5e / v6e: 128 MiB physical VMEM
        vmem_limit = 96 * (1 << 20)
        target_bytes = 6 * (1 << 20)
    else:                                # v7x: 64 MiB physical per TensorCore
        vmem_limit = 48 * (1 << 20)
        target_bytes = 3 * (1 << 20)

    # Bytes resident regardless of tile choice (assume weight/bias may end up
    # double-buffered on the fallback path, to stay conservative).
    w_bytes = C_out * C_in * itemsize
    b_bytes = C_out * 4
    resident = 2 * (w_bytes + b_bytes)
    block_budget = max(1 << 20, int(vmem_limit * 0.8) - resident)

    # ---- spatial tile TS: multiple of 128, sized by the working-set target and
    #      clamped by the double-buffered VMEM budget (accounts for C_in/C_out).
    col_bytes = (C_in + C_out) * itemsize          # bytes per lane column per batch elem
    ts_target = (target_bytes // col_bytes) // 128 * 128
    ts_vmem = (block_budget // (2 * col_bytes)) // 128 * 128
    TS = int(max(128, min(S_pad, ts_target, ts_vmem)))

    # ---- batch block B: fill the rest of the target, keep the in-kernel loop
    #      short, keep >= 2 batch grid steps whenever N > 1 (megacore).
    per_elem = col_bytes * TS
    B = max(1, target_bytes // per_elem)
    B = int(min(B, N, 8))
    if N > 1:
        B = min(B, pl.cdiv(N, 2))
    B = int(max(1, min(B, max(1, block_budget // (2 * per_elem)))))

    # ---- degenerate-grid fix: if the batch axis has a single step, split the
    #      spatial axis into >= 2 (ideally 4) tiles for megacore + pipelining.
    grid_n = pl.cdiv(N, B)
    if grid_n == 1 and pl.cdiv(S_pad, TS) < 2 and S_pad >= 256:
        desired = 4 if S_pad >= 512 else 2
        TS = int(max(128, (S_pad // desired) // 128 * 128))
    grid = (grid_n, pl.cdiv(S_pad, TS))

    out_shape = jax.ShapeDtypeStruct((N, C_out, S_pad), x.dtype)

    def build(single_buffer_consts):
        pmode = {"pipeline_mode": pl.Buffered(1)} if single_buffer_consts else {}
        return pl.pallas_call(
            _projector_kernel,
            out_shape=out_shape,
            grid_spec=pltpu.PrefetchScalarGridSpec(
                num_scalar_prefetch=0,
                grid=grid,
                in_specs=[
                    pl.BlockSpec((B, C_in, TS), lambda n, s: (n, 0, s)),      # x
                    pl.BlockSpec((C_out, C_in), lambda n, s: (0, 0), **pmode),  # folded weight
                    pl.BlockSpec((C_out, 1), lambda n, s: (0, 0), **pmode),     # folded bias
                ],
                out_specs=pl.BlockSpec((B, C_out, TS), lambda n, s: (n, 0, s)),
            ),
            compiler_params=pltpu.CompilerParams(
                dimension_semantics=("parallel", "parallel"),
                vmem_limit_bytes=vmem_limit),
        )

    try:
        # Constant-index weight/bias blocks are never re-DMA'd; single-buffer
        # them so a large folded weight does not burn 2x VMEM.
        y3 = build(True)(x3, w_eff, b_eff)
    except Exception:
        # Fallback for JAX versions that reject Buffered(1): default buffering.
        y3 = build(False)(x3, w_eff, b_eff)

    if S_pad != S:
        y3 = y3[:, :, :S]
    return y3.reshape(N, C_out, H, W)


def _reference(x, params, *, eps=1e-5):
    """Pure-JAX reference of the same forward (inference-mode BN)."""
    w = params["conv_w"][:, :, 0, 0].astype(jnp.float32)
    y = jnp.einsum("oc,nchw->nohw", w, x.astype(jnp.float32))
    scale = params["bn_gamma"] / jnp.sqrt(params["bn_var"] + eps)
    bias = params["bn_beta"] - params["bn_mean"] * scale
    y = y * scale[None, :, None, None] + bias[None, :, None, None]
    return jnp.maximum(y, 0.0)


if __name__ == "__main__":
    key = jax.random.PRNGKey(0)
    N, C_in, C_out, H, W = 2, 4, 8, 16, 16

    k = jax.random.split(key, 6)
    x = jax.random.normal(k[0], (N, C_in, H, W), jnp.float32)

    params = {
        # Conv2d(C_in, C_out, kernel_size=1, bias=False) -> weight (C_out, C_in, 1, 1)
        "conv_w": jax.random.uniform(k[1], (C_out, C_in, 1, 1), jnp.float32, -0.5, 0.5),
        # BatchNorm2d(C_out), inference-mode stats
        "bn_gamma": jax.random.uniform(k[2], (C_out,), jnp.float32, 0.5, 1.5),
        "bn_beta": jax.random.normal(k[3], (C_out,), jnp.float32) * 0.1,
        "bn_mean": jax.random.normal(k[4], (C_out,), jnp.float32) * 0.1,
        "bn_var": jax.random.uniform(k[5], (C_out,), jnp.float32, 0.5, 1.5),
    }

    # f32 path (tight check)
    y = jax.block_until_ready(projector_block(x, params))
    y_ref = _reference(x, params)
    assert y.shape == (N, C_out, H, W)
    assert jnp.allclose(y, y_ref, rtol=1e-5, atol=1e-5), float(jnp.max(jnp.abs(y - y_ref)))

    # bf16 I/O path: bf16 stays native on the MXU, f32 accumulation inside.
    x_bf = x.astype(jnp.bfloat16)
    y_bf = jax.block_until_ready(projector_block(x_bf, params))
    y_ref_bf = _reference(x_bf.astype(jnp.float32), params)
    assert y_bf.dtype == jnp.bfloat16
    assert jnp.allclose(y_bf.astype(jnp.float32), y_ref_bf, rtol=5e-2, atol=5e-2)

    print("KERNEL_OK")
</pallas_src>

<mosaic_0001>
module attributes {stable_mosaic.version = 11 : i64} {
  func.func @_projector_kernel(%arg0: i32, %arg1: i32, %arg2: memref<1x4x256xf32, #tpu.memory_space<vmem>>, %arg3: memref<8x4xf32, #tpu.memory_space<vmem>>, %arg4: memref<8x1xf32, #tpu.memory_space<vmem>>, %arg5: memref<1x8x256xf32, #tpu.memory_space<vmem>>) attributes {dimension_semantics = [#tpu.dimension_semantics<parallel>, #tpu.dimension_semantics<parallel>], iteration_bounds = array<i64: 2, 1>, scalar_prefetch = 0 : i64, scratch_operands = 0 : i64, tpu.core_type = #tpu.core_type<tc>, window_params = [{transform_indices = @transform_0, window_bounds = array<i64: 1, 4, 256>}, {pipeline_mode = #tpu.pipeline_mode<synchronous>, transform_indices = @transform_1, window_bounds = array<i64: 8, 4>}, {pipeline_mode = #tpu.pipeline_mode<synchronous>, transform_indices = @transform_2, window_bounds = array<i64: 8, 1>}, {transform_indices = @transform_3, window_bounds = array<i64: 1, 8, 256>}]} {
    %c0 = arith.constant 0 : index
    %c0_0 = arith.constant 0 : index
    %0 = vector.load %arg3[%c0, %c0_0] : memref<8x4xf32, #tpu.memory_space<vmem>>, vector<8x4xf32>
    %c0_1 = arith.constant 0 : index
    %c0_2 = arith.constant 0 : index
    %1 = vector.load %arg4[%c0_1, %c0_2] : memref<8x1xf32, #tpu.memory_space<vmem>>, vector<8x1xf32>
    %2 = vector.shape_cast %1 : vector<8x1xf32> to vector<8x1xf32>
    %3 = vector.broadcast %2 : vector<8x1xf32> to vector<8x256xf32>
    %c0_i32 = arith.constant 0 : i32
    %4 = arith.index_cast %c0_i32 : i32 to index
    %c0_3 = arith.constant 0 : index
    %c0_4 = arith.constant 0 : index
    %5 = vector.load %arg2[%4, %c0_3, %c0_4] : memref<1x4x256xf32, #tpu.memory_space<vmem>>, vector<1x4x256xf32>
    %6 = vector.shape_cast %5 : vector<1x4x256xf32> to vector<4x256xf32>
    %cst = arith.constant dense<0.000000e+00> : vector<8x256xf32>
    %7 = tpu.matmul %0, %6, %cst {dimension_numbers = #tpu.dot_dimension_numbers<[1], [0], [0], [1], [0, 0, 1, 1], [], []>} : vector<8x4xf32>, vector<4x256xf32>, vector<8x256xf32> -> vector<8x256xf32>
    %8 = arith.addf %7, %3 : vector<8x256xf32>
    %cst_5 = arith.constant 0.000000e+00 : f32
    %9 = vector.broadcast %cst_5 : f32 to vector<8x256xf32>
    %10 = arith.maximumf %8, %9 : vector<8x256xf32>
    %11 = arith.index_cast %c0_i32 : i32 to index
    %c0_6 = arith.constant 0 : index
    %c0_7 = arith.constant 0 : index
    %12 = vector.load %arg5[%11, %c0_6, %c0_7] : memref<1x8x256xf32, #tpu.memory_space<vmem>>, vector<1x8x256xf32>
    %13 = vector.shape_cast %12 : vector<1x8x256xf32> to vector<8x256xf32>
    %14 = vector.shape_cast %10 : vector<8x256xf32> to vector<1x8x256xf32>
    tpu.vector_store %arg5[%11, %c0_6, %c0_7], %14 {strides = array<i32>} : memref<1x8x256xf32, #tpu.memory_space<vmem>>, vector<1x8x256xf32>,
    %c1_i32 = arith.constant 1 : i32
    return
  }
  func.func @transform_0(%arg0: i32, %arg1: i32) -> (i32, i32, i32) {
    %c0_i32 = arith.constant 0 : i32
    %c0_i32_0 = arith.constant 0 : i32
    return %arg0, %c0_i32, %arg1 : i32, i32, i32
  }
  func.func @transform_1(%arg0: i32, %arg1: i32) -> (i32, i32) {
    %c0_i32 = arith.constant 0 : i32
    %c0_i32_0 = arith.constant 0 : i32
    %c0_i32_1 = arith.constant 0 : i32
    return %c0_i32, %c0_i32_0 : i32, i32
  }
  func.func @transform_2(%arg0: i32, %arg1: i32) -> (i32, i32) {
    %c0_i32 = arith.constant 0 : i32
    %c0_i32_0 = arith.constant 0 : i32
    %c0_i32_1 = arith.constant 0 : i32
    return %c0_i32, %c0_i32_0 : i32, i32
  }
  func.func @transform_3(%arg0: i32, %arg1: i32) -> (i32, i32, i32) {
    %c0_i32 = arith.constant 0 : i32
    %c0_i32_0 = arith.constant 0 : i32
    return %arg0, %c0_i32, %arg1 : i32, i32, i32
  }
}

module attributes {stable_mosaic.version = 11 : i64} {
  func.func @_projector_kernel(%arg0: i32, %arg1: i32, %arg2: memref<1x4x256xf32, #tpu.memory_space<vmem>>, %arg3: memref<8x4xf32, #tpu.memory_space<vmem>>, %arg4: memref<8x1xf32, #tpu.memory_space<vmem>>, %arg5: memref<1x8x256xf32, #tpu.memory_space<vmem>>) attributes {dimension_semantics = [#tpu.dimension_semantics<parallel>, #tpu.dimension_semantics<parallel>], iteration_bounds = array<i64: 2, 1>, scalar_prefetch = 0 : i64, scratch_operands = 0 : i64, tpu.core_type = #tpu.core_type<tc>, window_params = [{transform_indices = @transform_0, window_bounds = array<i64: 1, 4, 256>}, {pipeline_mode = #tpu.pipeline_mode<synchronous>, transform_indices = @transform_1, window_bounds = array<i64: 8, 4>}, {pipeline_mode = #tpu.pipeline_mode<synchronous>, transform_indices = @transform_2, window_bounds = array<i64: 8, 1>}, {transform_indices = @transform_3, window_bounds = array<i64: 1, 8, 256>}]} {
    %c0 = arith.constant 0 : index
    %c0_0 = arith.constant 0 : index
    %0 = vector.load %arg3[%c0, %c0_0] : memref<8x4xf32, #tpu.memory_space<vmem>>, vector<8x4xf32>
    %c0_1 = arith.constant 0 : index
    %c0_2 = arith.constant 0 : index
    %1 = vector.load %arg4[%c0_1, %c0_2] : memref<8x1xf32, #tpu.memory_space<vmem>>, vector<8x1xf32>
    %2 = vector.shape_cast %1 : vector<8x1xf32> to vector<8x1xf32>
    %3 = vector.broadcast %2 : vector<8x1xf32> to vector<8x256xf32>
    %c0_i32 = arith.constant 0 : i32
    %4 = arith.index_cast %c0_i32 : i32 to index
    %c0_3 = arith.constant 0 : index
    %c0_4 = arith.constant 0 : index
    %5 = vector.load %arg2[%4, %c0_3, %c0_4] : memref<1x4x256xf32, #tpu.memory_space<vmem>>, vector<1x4x256xf32>
    %6 = vector.shape_cast %5 : vector<1x4x256xf32> to vector<4x256xf32>
    %cst = arith.constant dense<0.000000e+00> : vector<8x256xf32>
    %7 = tpu.matmul %0, %6, %cst {dimension_numbers = #tpu.dot_dimension_numbers<[1], [0], [0], [1], [0, 0, 1, 1], [], []>} : vector<8x4xf32>, vector<4x256xf32>, vector<8x256xf32> -> vector<8x256xf32>
    %8 = arith.addf %7, %3 : vector<8x256xf32>
    %cst_5 = arith.constant 0.000000e+00 : f32
    %9 = vector.broadcast %cst_5 : f32 to vector<8x256xf32>
    %10 = arith.maximumf %8, %9 : vector<8x256xf32>
    %11 = arith.index_cast %c0_i32 : i32 to index
    %c0_6 = arith.constant 0 : index
    %c0_7 = arith.constant 0 : index
    %12 = vector.load %arg5[%11, %c0_6, %c0_7] : memref<1x8x256xf32, #tpu.memory_space<vmem>>, vector<1x8x256xf32>
    %13 = vector.shape_cast %12 : vector<1x8x256xf32> to vector<8x256xf32>
    %14 = vector.shape_cast %10 : vector<8x256xf32> to vector<1x8x256xf32>
    tpu.vector_store %arg5[%11, %c0_6, %c0_7], %14 {strides = array<i32>} : memref<1x8x256xf32, #tpu.memory_space<vmem>>, vector<1x8x256xf32>,
    %c1_i32 = arith.constant 1 : i32
    return
  }
  func.func @transform_0(%arg0: i32, %arg1: i32) -> (i32, i32, i32) {
    %c0_i32 = arith.constant 0 : i32
    %c0_i32_0 = arith.constant 0 : i32
    return %arg0, %c0_i32, %arg1 : i32, i32, i32
  }
  func.func @transform_1(%arg0: i32, %arg1: i32) -> (i32, i32) {
    %c0_i32 = arith.constant 0 : i32
    %c0_i32_0 = arith.constant 0 : i32
    %c0_i32_1 = arith.constant 0 : i32
    return %c0_i32, %c0_i32_0 : i32, i32
  }
  func.func @transform_2(%arg0: i32, %arg1: i32) -> (i32, i32) {
    %c0_i32 = arith.constant 0 : i32
    %c0_i32_0 = arith.constant 0 : i32
    %c0_i32_1 = arith.constant 0 : i32
    return %c0_i32, %c0_i32_0 : i32, i32
  }
  func.func @transform_3(%arg0: i32, %arg1: i32) -> (i32, i32, i32) {
    %c0_i32 = arith.constant 0 : i32
    %c0_i32_0 = arith.constant 0 : i32
    return %arg0, %c0_i32, %arg1 : i32, i32, i32
  }
}

</mosaic_0001>

<bundles_post_ra>
// kernel: tpu_custom_call.1
= control target key start
LH: loop header
LB: loop body
LE: loop exit
PB: predicated region body
PF: predicated region fallthrough
CT: control target
= control target key end

     0   :  { %8 = vsyncpa [#allocation3], 0  ;;  %s670_s0 = inlined_call_operand.vmem [shape: f32[2,4,256], index: 0, kind: input, shape index: {}]   ;;  %s671_s1 = inlined_call_operand.vmem [shape: f32[8,4], index: 1, kind: input, shape index: {}]   ;;  %s672_s2 = inlined_call_operand.vmem [shape: f32[8,1], index: 2, kind: input, shape index: {}]   ;;  %s673_s3 = inlined_call_operand.hbm [shape: f32[2,8,256], index: 3, kind: output, shape index: {}]  }
   0x1   :  { %10 = vsyncpa [#allocation3 + $0x1], 0  ;;  %s565_s12 = smov 0   ;;  %s567_s13 = smov 0  }
   0x2   :  { %s569_s14 = smov 0   ;;  %s571_s15 = smov 0  }
   0x3   :  { %s573_s16 = smov 0   ;;  %s575_s17 = smov 0  }
   0x4 LB: > { %s387_s18 = sadd.s32 4294967295, %s540_s17   ;;  %s388_s19 = sadd.s32 4294967294, %s540_s17   ;;  %s540_s17 = sphi %s575_s17, %s16_s17   ;;  %s536_s16 = sphi %s573_s16, %s680_s16   ;;  %s532_s15 = sphi %s571_s15, %s679_s15   ;;  %s528_s14 = sphi %s569_s14, %s678_s14   ;;  %s524_s13 = sphi %s567_s13, %s677_s13   ;;  %s520_s12 = sphi %s565_s12, %s676_s12  }
   0x5   : > { %s28_s20 = sadd.s32 1, %s536_s16  ;;  %s107_s21 = sadd.s32 1, %s528_s14 }
   0x6   : > { %p30_p0 = scmp.ge.s32.totalorder %s28_s20, 2  ;;  %p117_p1 = scmp.ne.s32.totalorder %s528_s14, %s524_s13 }
   0x7   : > { %p118_p2 = scmp.eq.s32.totalorder %s387_s18, 1  ;;  %p123_p3 = scmp.ne.s32.totalorder %s524_s13, %s520_s12 }
   0x8   : > { %s682_s20 = smov (%p30_p0, %s28_s20), 0  ;;  %p124_p5 = scmp.eq.s32.totalorder %s388_s19, 1 }
   0x9   : > { %p605_p4 = por %p118_p2, %p117_p1  ;;  %s102_s23 = ssub.s32 %s536_s16, %s682_s20 }
   0xa   : > { %p391_p6 = scmp.ge.s32.totalorder %s540_s17, 1  ;;  %p105_p7 = scmp.eq.s32.totalorder %s102_s23, 0 }
   0xb   : > { %p612_p8 = por %p124_p5, %p123_p3  ;;  %p161_p9 = scmp.lt.s32.totalorder %s540_s17, 3 }
   0xc   : > { %s618_s25 = scalar_select %p105_p7, %s528_s14, %s107_s21  }
   0xd   : > { %p162_p10 = pnand %p391_p6, %p161_p9 }
   0xe   : > { %p190_p11 = scmp.lt.s32.totalorder (!%p162_p10), %s532_s15, 1  ;;  %s186_s8 = sand.u32 (!%p162_p10), 1, %s524_s13  }
   0xf   : > { %165 = sbr.rel (%p162_p10) target bundleno = 241 (0xf1), region = 32  ;;  %s392_s9 = sshll.u32 (!%p162_p10), %s186_s8, 4 }
  0x10   : > { %s404_s10 = sshll.u32 (!%p162_p10), %s532_s15, 8  ;;  %s188_s11 = scalar_lea.vmem (!%p162_p10), [#allocation2], %s392_s9 }
  0x11   : > { %s311_s18 = sshll.u32 (!%p162_p10), %s188_s11, 4  ;;  %s309_s23 = scalar_lea.hbm (!%p162_p10), %s673_s3, %s404_s10  ;;  %s312_s18 = int_to_ptr.vmem [resolvable:$true] %s311_s18 }
  0x12   : > { %s295_s26 = scalar_lea.sflag (!%p162_p10), [#allocation3], %s186_s8  ;;  %s464_s27 = scalar_lea.vmem (!%p162_p10), %s312_s18, 256 }
  0x13   : > { %p465_p12 = scmp.ne.s32.totalorder (!%p162_p10), %s312_s18, %s464_s27 }
  0x14   : > { %v542_v0 = vmov 0.0   ;;  %v543_v1 = vmov 0   ;;  %v201_v2 = vld [vmem:[%s672_s2] sm:$0xff]  ;;  %s191_s28 = scalar_select %p190_p11, %s532_s15, 1  ;;  %vm214_vm0 = vcmask 1043456   ;;  %vm210_vm1 = vcmask 31744  }
  0x15   : > { %283 = vmatprep.mubr.f32.mxu0 %v542_v0  ;;  %462 = vset.pattern.permute.xlu0 %v543_v1  ;;  %v200_v5 = vld [vmem:[%s671_s1] sm:$0xff]  ;;  %p466_p13 = pnand %p465_p12, %p605_p4 }
  0x16   : > { %204 = vperm.xlu0 %462, %v201_v2   ;;  %s403_s29 = sshll.u32 %s191_s28, 3  ;;  %s544_s28 = smov [#allocation2]  }
  0x17   : > { %s197_s5 = scalar_lea.vmem %s670_s0, %s403_s29  ;;  %p467_p0 = pneg %p466_p13 }
  0x18   : > { %v207_v3 = vld [vmem:[%s197_s5] sm:$0xff]  ;;  %s468_s15 = sshll.u32 %s544_s28, 4  ;;  %s469_s15 = int_to_ptr.vmem [resolvable:$false] %s468_s15 }
  0x19   : > { %v209_v4 = vcombine.high %v207_v3, %v207_v3  ;;  %s470_s29 = scalar_lea.vmem %s469_s15, 512  ;;  %p471_p1 = scmp.lt.s32.totalorder %s312_s18, %s469_s15 }
  0x1a   : > { %p472_p2 = scmp.lt.s32.totalorder %s470_s29, %s464_s27 }
  0x1b   : > { %395 = vmatprep.subr.msk.mxu0 %vm214_vm0, %v209_v4 }
  0x1c   : > { %396 = vmatpush1.msk.msra.mxu0 %vm214_vm0, %v207_v3  ;;  %p473_p3 = por %p472_p2, %p471_p1 }
  0x1d   : > { %397 = vmatmul.mubr.msk.f32.vlgmr.msra.gmra.mxu0 %vm210_vm1, %v200_v5 }
  0x1e   : > { %p474_p5 = pnand %p473_p3, %p467_p0 }
  0x91   : > { %v205_v6 = vpop.permute.xlu0 %204 }
  0xdd   : > { %v285_v7 = vpop.f32.mrf.mxu0 }
  0xde   : > { %v286_v8 = vadd.f32 %v285_v7, %v205_v6 }
  0xdf   : > { %v287_v9 = vpop.f32.mrf.mxu0 }
  0xe0   : > { %v290_v10 = vmax.f32 %v286_v8, 0.0  ;;  %v288_v11 = vadd.f32 %v287_v9, %v205_v6 }
  0xe2   : > { %292 = vst [vmem:[%s188_s11] sm:$0xff] %v290_v10  ;;  %v291_v12 = vmax.f32 %v288_v11, 0.0 }
  0xe4   : > { %293 = vst [vmem:[%s188_s11 + $0x8] sm:$0xff] %v291_v12 }
  0xe5   : > { %477 = shalt.err (!%p474_p5)
}
  0xe6   : > { %s478_s30 = scalar_lea.hbm %s309_s23, 256  ;;  %s482_s6 = scalar_lea.hbm %s673_s3, 512 }
  0xe7   : > { %p479_p6 = scmp.ne.s32.totalorder %s309_s23, %s478_s30  ;;  %p483_p10 = scmp.lt.s32.totalorder %s309_s23, %s673_s3 }
  0xe8   : > { %p484_p11 = scmp.lt.s32.totalorder %s482_s6, %s478_s30 }
  0xe9   : > { %p480_p7 = pnand %p479_p6, %p605_p4 }
  0xea   : > { %p485_p12 = por %p484_p11, %p483_p10 }
  0xeb   : > { %p481_p9 = pneg %p480_p7 }
  0xed   : > { %p486_p13 = pnand %p485_p12, %p481_p9 }
  0xef   : > { %489 = shalt.err (!%p486_p13)
}
  0xf0   : > { %405 = dma.vmem_to_hbm [thread:$0]  (%p605_p4), %s312_s18, 256, %s309_s23, %s295_s26  }
  0xf1 PF: > { %p411_p0 = scmp.ge.s32.totalorder %s540_s17, 2  ;;  %s323_s9 = sand.u32 1, %s520_s12  }
  0xf2   : > { %s324_s10 = scalar_lea.sflag [#allocation3], %s323_s9 }
  0xf3   : > { %p408_p1 = pnand %p411_p0, %p612_p8 }
  0xf5   : > { %p409_p2 = pneg %p408_p1 }
  0xf7   : > { %515 = dma.done.wait (%p409_p2), %s324_s10, 256  }
  0xf8   : > { %517 = vsyncadd (%p409_p2), %s324_s10, 4294967040  ;;  %s16_s17 = sadd.s32 1, %s540_s17   ;;  %s676_s12 = smov %s524_s13 }
  0xf9   : > { %p13_p3 = scmp.ge.s32.totalorder %s16_s17, 4   ;;  %s677_s13 = smov %s528_s14 }
  0xfa   : > { %s678_s14 = smov %s618_s25  ;;  %s679_s15 = smov %s536_s16 }
  0xfb   : > { %s680_s16 = smov %s682_s20  ;;  %15 = sbr.rel (!%p13_p3) target bundleno = 4 (0x4), region = 67 }
 0x100   :  { %329 = vsyncpa [#allocation3], 1 }
 0x101   :  { %331 = vsyncpa [#allocation3 + $0x1], 1 }

// kernel: tpu_custom_call.1
= control target key start
LH: loop header
LB: loop body
LE: loop exit
PB: predicated region body
PF: predicated region fallthrough
CT: control target
= control target key end

     0   :  { %8 = vsyncpa [#allocation3], 0  ;;  %s670_s0 = inlined_call_operand.vmem [shape: f32[2,4,256], index: 0, kind: input, shape index: {}]   ;;  %s671_s1 = inlined_call_operand.vmem [shape: f32[8,4], index: 1, kind: input, shape index: {}]   ;;  %s672_s2 = inlined_call_operand.vmem [shape: f32[8,1], index: 2, kind: input, shape index: {}]   ;;  %s673_s3 = inlined_call_operand.hbm [shape: f32[2,8,256], index: 3, kind: output, shape index: {}]  }
   0x1   :  { %10 = vsyncpa [#allocation3 + $0x1], 0  ;;  %s565_s12 = smov 0   ;;  %s567_s13 = smov 0  }
   0x2   :  { %s569_s14 = smov 0   ;;  %s571_s15 = smov 0  }
   0x3   :  { %s573_s16 = smov 0   ;;  %s575_s17 = smov 0  }
   0x4 LB: > { %s387_s18 = sadd.s32 4294967295, %s540_s17   ;;  %s388_s19 = sadd.s32 4294967294, %s540_s17   ;;  %s540_s17 = sphi %s575_s17, %s16_s17   ;;  %s536_s16 = sphi %s573_s16, %s680_s16   ;;  %s532_s15 = sphi %s571_s15, %s679_s15   ;;  %s528_s14 = sphi %s569_s14, %s678_s14   ;;  %s524_s13 = sphi %s567_s13, %s677_s13   ;;  %s520_s12 = sphi %s565_s12, %s676_s12  }
   0x5   : > { %s28_s20 = sadd.s32 1, %s536_s16  ;;  %s107_s21 = sadd.s32 1, %s528_s14 }
   0x6   : > { %p30_p0 = scmp.ge.s32.totalorder %s28_s20, 2  ;;  %p117_p1 = scmp.ne.s32.totalorder %s528_s14, %s524_s13 }
   0x7   : > { %p118_p2 = scmp.eq.s32.totalorder %s387_s18, 1  ;;  %p123_p3 = scmp.ne.s32.totalorder %s524_s13, %s520_s12 }
   0x8   : > { %s682_s20 = smov (%p30_p0, %s28_s20), 0  ;;  %p124_p5 = scmp.eq.s32.totalorder %s388_s19, 1 }
   0x9   : > { %p605_p4 = por %p118_p2, %p117_p1  ;;  %s102_s23 = ssub.s32 %s536_s16, %s682_s20 }
   0xa   : > { %p391_p6 = scmp.ge.s32.totalorder %s540_s17, 1  ;;  %p105_p7 = scmp.eq.s32.totalorder %s102_s23, 0 }
   0xb   : > { %p612_p8 = por %p124_p5, %p123_p3  ;;  %p161_p9 = scmp.lt.s32.totalorder %s540_s17, 3 }
   0xc   : > { %s618_s25 = scalar_select %p105_p7, %s528_s14, %s107_s21  }
   0xd   : > { %p162_p10 = pnand %p391_p6, %p161_p9 }
   0xe   : > { %p190_p11 = scmp.lt.s32.totalorder (!%p162_p10), %s532_s15, 1  ;;  %s186_s8 = sand.u32 (!%p162_p10), 1, %s524_s13  }
   0xf   : > { %165 = sbr.rel (%p162_p10) target bundleno = 241 (0xf1), region = 32  ;;  %s392_s9 = sshll.u32 (!%p162_p10), %s186_s8, 4 }
  0x10   : > { %s404_s10 = sshll.u32 (!%p162_p10), %s532_s15, 8  ;;  %s188_s11 = scalar_lea.vmem (!%p162_p10), [#allocation2], %s392_s9 }
  0x11   : > { %s311_s18 = sshll.u32 (!%p162_p10), %s188_s11, 4  ;;  %s309_s23 = scalar_lea.hbm (!%p162_p10), %s673_s3, %s404_s10  ;;  %s312_s18 = int_to_ptr.vmem [resolvable:$true] %s311_s18 }
  0x12   : > { %s295_s26 = scalar_lea.sflag (!%p162_p10), [#allocation3], %s186_s8  ;;  %s464_s27 = scalar_lea.vmem (!%p162_p10), %s312_s18, 256 }
  0x13   : > { %p465_p12 = scmp.ne.s32.totalorder (!%p162_p10), %s312_s18, %s464_s27 }
  0x14   : > { %v542_v0 = vmov 0.0   ;;  %v543_v1 = vmov 0   ;;  %v201_v2 = vld [vmem:[%s672_s2] sm:$0xff]  ;;  %s191_s28 = scalar_select %p190_p11, %s532_s15, 1  ;;  %vm214_vm0 = vcmask 1043456   ;;  %vm210_vm1 = vcmask 31744  }
  0x15   : > { %283 = vmatprep.mubr.f32.mxu0 %v542_v0  ;;  %462 = vset.pattern.permute.xlu0 %v543_v1  ;;  %v200_v5 = vld [vmem:[%s671_s1] sm:$0xff]  ;;  %p466_p13 = pnand %p465_p12, %p605_p4 }
  0x16   : > { %204 = vperm.xlu0 %462, %v201_v2   ;;  %s403_s29 = sshll.u32 %s191_s28, 3  ;;  %s544_s28 = smov [#allocation2]  }
  0x17   : > { %s197_s5 = scalar_lea.vmem %s670_s0, %s403_s29  ;;  %p467_p0 = pneg %p466_p13 }
  0x18   : > { %v207_v3 = vld [vmem:[%s197_s5] sm:$0xff]  ;;  %s468_s15 = sshll.u32 %s544_s28, 4  ;;  %s469_s15 = int_to_ptr.vmem [resolvable:$false] %s468_s15 }
  0x19   : > { %v209_v4 = vcombine.high %v207_v3, %v207_v3  ;;  %s470_s29 = scalar_lea.vmem %s469_s15, 512  ;;  %p471_p1 = scmp.lt.s32.totalorder %s312_s18, %s469_s15 }
  0x1a   : > { %p472_p2 = scmp.lt.s32.totalorder %s470_s29, %s464_s27 }
  0x1b   : > { %395 = vmatprep.subr.msk.mxu0 %vm214_vm0, %v209_v4 }
  0x1c   : > { %396 = vmatpush1.msk.msra.mxu0 %vm214_vm0, %v207_v3  ;;  %p473_p3 = por %p472_p2, %p471_p1 }
  0x1d   : > { %397 = vmatmul.mubr.msk.f32.vlgmr.msra.gmra.mxu0 %vm210_vm1, %v200_v5 }
  0x1e   : > { %p474_p5 = pnand %p473_p3, %p467_p0 }
  0x91   : > { %v205_v6 = vpop.permute.xlu0 %204 }
  0xdd   : > { %v285_v7 = vpop.f32.mrf.mxu0 }
  0xde   : > { %v286_v8 = vadd.f32 %v285_v7, %v205_v6 }
  0xdf   : > { %v287_v9 = vpop.f32.mrf.mxu0 }
  0xe0   : > { %v290_v10 = vmax.f32 %v286_v8, 0.0  ;;  %v288_v11 = vadd.f32 %v287_v9, %v205_v6 }
  0xe2   : > { %292 = vst [vmem:[%s188_s11] sm:$0xff] %v290_v10  ;;  %v291_v12 = vmax.f32 %v288_v11, 0.0 }
  0xe4   : > { %293 = vst [vmem:[%s188_s11 + $0x8] sm:$0xff] %v291_v12 }
  0xe5   : > { %477 = shalt.err (!%p474_p5)
}
  0xe6   : > { %s478_s30 = scalar_lea.hbm %s309_s23, 256  ;;  %s482_s6 = scalar_lea.hbm %s673_s3, 512 }
  0xe7   : > { %p479_p6 = scmp.ne.s32.totalorder %s309_s23, %s478_s30  ;;  %p483_p10 = scmp.lt.s32.totalorder %s309_s23, %s673_s3 }
  0xe8   : > { %p484_p11 = scmp.lt.s32.totalorder %s482_s6, %s478_s30 }
  0xe9   : > { %p480_p7 = pnand %p479_p6, %p605_p4 }
  0xea   : > { %p485_p12 = por %p484_p11, %p483_p10 }
  0xeb   : > { %p481_p9 = pneg %p480_p7 }
  0xed   : > { %p486_p13 = pnand %p485_p12, %p481_p9 }
  0xef   : > { %489 = shalt.err (!%p486_p13)
}
  0xf0   : > { %405 = dma.vmem_to_hbm [thread:$0]  (%p605_p4), %s312_s18, 256, %s309_s23, %s295_s26  }
  0xf1 PF: > { %p411_p0 = scmp.ge.s32.totalorder %s540_s17, 2  ;;  %s323_s9 = sand.u32 1, %s520_s12  }
  0xf2   : > { %s324_s10 = scalar_lea.sflag [#allocation3], %s323_s9 }
  0xf3   : > { %p408_p1 = pnand %p411_p0, %p612_p8 }
  0xf5   : > { %p409_p2 = pneg %p408_p1 }
  0xf7   : > { %515 = dma.done.wait (%p409_p2), %s324_s10, 256  }
  0xf8   : > { %517 = vsyncadd (%p409_p2), %s324_s10, 4294967040  ;;  %s16_s17 = sadd.s32 1, %s540_s17   ;;  %s676_s12 = smov %s524_s13 }
  0xf9   : > { %p13_p3 = scmp.ge.s32.totalorder %s16_s17, 4   ;;  %s677_s13 = smov %s528_s14 }
  0xfa   : > { %s678_s14 = smov %s618_s25  ;;  %s679_s15 = smov %s536_s16 }
  0xfb   : > { %s680_s16 = smov %s682_s20  ;;  %15 = sbr.rel (!%p13_p3) target bundleno = 4 (0x4), region = 67 }
 0x100   :  { %329 = vsyncpa [#allocation3], 1 }
 0x101   :  { %331 = vsyncpa [#allocation3 + $0x1], 1 }

</bundles_post_ra>
